<compile_context>
chip_gen: v5e
topology: v5e:2x2
jax: 0.10.0
libtpu: 0.0.40
codegen_flags: <defaults>
</compile_context>

<pallas_src>
import jax
import jax.numpy as jnp
from jax.experimental import pallas as pl
from jax.experimental.pallas import tpu as pltpu


def _round_up(v, m):
    return ((v + m - 1) // m) * m


def _mish(v):
    # mish(x) = x * tanh(softplus(x)) = x * ((1+e^x)^2 - 1) / ((1+e^x)^2 + 1)
    # One exp + one approx reciprocal on the EUP instead of exp/log1p/tanh.
    # Clamp the exp argument so (1+e^x)^2 cannot overflow; for x > 20 the true
    # mish(x) == x to f32 precision and the clamped form returns exactly that.
    e = jnp.exp(jnp.minimum(v, 20.0))
    n = (1.0 + e) * (1.0 + e)
    return v * (n - 1.0) * pl.reciprocal(n + 1.0, approx=True)


# Slab layouts (see pack_params).
_W_LW0C, _W_LW1, _W_LW2, _W_OW = 0, 1, 2, 3                        # whh (4, P_h, P_h)
_B_PB0, _B_PB2, _B_LB0, _B_LB1, _B_LB2, _B_OB = 0, 1, 2, 3, 4, 5   # bh  (6, 1, P_h)


def mlpnet_kernel(x_ref, cond_ref, pw0_ref, pw1_ref, pw2_ref, lw0x_ref,
                  whh_ref, bh_ref, pb1_ref, o_ref):
    """One batch tile of the fused MLPnet forward.

    x_ref    : (TB, in_dim)     input rows (native width)
    cond_ref : (TB, cond_dim)   condition rows (native width)
    pw0_ref  : (cond_dim, P_h)  pref_mlp layer-0 weight (bf16)
    pw1_ref  : (P_h, P_4h)      pref_mlp layer-1 weight (bf16)
    pw2_ref  : (P_4h, P_h)      pref_mlp layer-2 weight (bf16)
    lw0x_ref : (in_dim, P_h)    x-part of layer-0 weight (bf16)
    whh_ref  : (4, P_h, P_h)    [lw0c, lw1, lw2, ow]   (bf16)
    bh_ref   : (6, 1, P_h)      [pb0, pb2, lb0, lb1, lb2, ob]  (f32)
    pb1_ref  : (1, P_4h)        pref_mlp layer-1 bias  (f32)
    o_ref    : (TB, out_dim)    output rows (native width)
    """
    f32 = jnp.float32

    def dot(a, w):
        # MXU matmul: cast activations to the (bf16) weight dtype, accumulate f32.
        return jnp.dot(a.astype(w.dtype), w, preferred_element_type=f32)

    # ---- pref_mlp(cond): Linear -> Mish -> Linear -> Mish -> Linear ----
    c = _mish(dot(cond_ref[...], pw0_ref[...]) + bh_ref[_B_PB0])   # (TB, P_h)
    c = _mish(dot(c, pw1_ref[...]) + pb1_ref[...])                 # (TB, P_4h)
    c = dot(c, pw2_ref[...]) + bh_ref[_B_PB2]                      # (TB, P_h)

    # ---- layer 0 on concat([x, cond_emb]):  x @ W0[:in_dim] + c @ W0[in_dim:] ----
    h = dot(x_ref[...], lw0x_ref[...]) + dot(c, whh_ref[_W_LW0C]) + bh_ref[_B_LB0]
    h = _mish(h)

    # ---- layers 1, 2 ----
    h = _mish(dot(h, whh_ref[_W_LW1]) + bh_ref[_B_LB1])
    h = _mish(dot(h, whh_ref[_W_LW2]) + bh_ref[_B_LB2])

    # ---- out_layer: Linear -> Tanh; keep only the live output lanes ----
    y = dot(h, whh_ref[_W_OW]) + bh_ref[_B_OB]                     # (TB, P_h)
    o_ref[...] = jnp.tanh(y[:, : o_ref.shape[-1]]).astype(o_ref.dtype)


def pack_params(params, *, weight_dtype=jnp.bfloat16):
    """Pad + pack the 15 MLPnet parameters ONCE, at init time.

    Zero padding is inert: padded weight rows/cols contribute 0 through every
    matmul and mish(0) = tanh(0) = 0, so results are exact.  Weights are stored
    in bf16 (MXU-native); biases stay f32 (added after f32 accumulation).
    """
    in_dim = params["lw0x"].shape[0]
    cond_dim = params["pw0"].shape[0]
    H = params["pw0"].shape[1]
    out_dim = params["ow"].shape[1]

    P_h = _round_up(max(H, out_dim), 128)     # width of every H-wide layer
    P_4h = _round_up(4 * H, 128)              # width of the 4H pref_mlp layer only

    def padw(w, rows, cols):
        w = jnp.pad(w, ((0, rows - w.shape[0]), (0, cols - w.shape[1])))
        return w.astype(weight_dtype)

    def padb(b, cols):
        return jnp.pad(b, ((0, 0), (0, cols - b.shape[1]))).astype(jnp.float32)

    packed = dict(
        pw0=padw(params["pw0"], cond_dim, P_h),
        pw1=padw(params["pw1"], P_h, P_4h),
        pw2=padw(params["pw2"], P_4h, P_h),
        lw0x=padw(params["lw0x"], in_dim, P_h),
        whh=jnp.stack([padw(params[k], P_h, P_h)
                       for k in ("lw0c", "lw1", "lw2", "ow")]),
        bh=jnp.stack([padb(params[k], P_h)
                      for k in ("pb0", "pb2", "lb0", "lb1", "lb2", "ob")]),
        pb1=padb(params["pb1"], P_4h),
    )
    packed.update(in_dim=in_dim, cond_dim=cond_dim, out_dim=out_dim,
                  hidden_dim=H, P_h=P_h, P_4h=P_4h)
    return packed


def mlpnet_forward(x, cond, packed, *, block_rows=512):
    """Fused MLPnet forward.  `packed` comes from pack_params (built once)."""
    batch, in_dim = x.shape
    cond_dim = cond.shape[1]
    out_dim = packed["out_dim"]
    assert in_dim == packed["in_dim"] and cond_dim == packed["cond_dim"]

    # Batch tile: produce >= 2 grid blocks whenever batch > 8 rows so the
    # "parallel" grid axis can be sharded across both v7x TensorCores; larger
    # batches use block_rows-row tiles (raise block_rows on v5e/v6e — 128 MiB
    # VMEM — if the per-step activation DMAs are exposed).
    if batch <= 2 * block_rows:
        tb = max(8, _round_up(pl.cdiv(batch, 2), 8))
    else:
        tb = block_rows
    if tb >= batch:
        tb = batch                       # single block covering the whole batch
    grid = (pl.cdiv(batch, tb),)

    row_map = lambda i: (i, 0)
    const2 = lambda i: (0, 0)
    const3 = lambda i: (0, 0, 0)
    # Parameter blocks never change across grid steps -> single-buffer them.
    resident = dict(pipeline_mode=pl.Buffered(1))

    return pl.pallas_call(
        mlpnet_kernel,
        out_shape=jax.ShapeDtypeStruct((batch, out_dim), jnp.float32),
        grid=grid,
        in_specs=[
            pl.BlockSpec((tb, in_dim), row_map),                      # x (pipelined)
            pl.BlockSpec((tb, cond_dim), row_map),                    # cond (pipelined)
            pl.BlockSpec(packed["pw0"].shape, const2, **resident),    # weights:
            pl.BlockSpec(packed["pw1"].shape, const2, **resident),    #   VMEM-resident,
            pl.BlockSpec(packed["pw2"].shape, const2, **resident),    #   single-buffered
            pl.BlockSpec(packed["lw0x"].shape, const2, **resident),
            pl.BlockSpec(packed["whh"].shape, const3, **resident),
            pl.BlockSpec(packed["bh"].shape, const3, **resident),
            pl.BlockSpec(packed["pb1"].shape, const2, **resident),
        ],
        out_specs=pl.BlockSpec((tb, out_dim), row_map),
        compiler_params=pltpu.CompilerParams(
            dimension_semantics=("parallel",),   # shard batch tiles across TCs on v7x
            vmem_limit_bytes=32 << 20,           # safe scoped limit on all generations
        ),
    )(x, cond, packed["pw0"], packed["pw1"], packed["pw2"], packed["lw0x"],
      packed["whh"], packed["bh"], packed["pb1"])


def make_params(key, in_dim, out_dim, cond_dim, hidden_dim):
    """Deterministic synthetic params.  Weights stored as [in, out]."""
    def linear(k, din, dout):
        kw, kb = jax.random.split(k)
        bound = 1.0 / jnp.sqrt(jnp.float32(din))
        w = jax.random.uniform(kw, (din, dout), jnp.float32, -bound, bound)
        b = jax.random.uniform(kb, (1, dout), jnp.float32, -bound, bound)
        return w, b

    keys = jax.random.split(key, 7)
    H = hidden_dim
    pw0, pb0 = linear(keys[0], cond_dim, H)
    pw1, pb1 = linear(keys[1], H, 4 * H)
    pw2, pb2 = linear(keys[2], 4 * H, H)
    lw0, lb0 = linear(keys[3], in_dim + H, H)   # layer 0 sees concat([x, cond_emb])
    lw1, lb1 = linear(keys[4], H, H)
    lw2, lb2 = linear(keys[5], H, H)
    ow, ob = linear(keys[6], H, out_dim)
    return dict(
        pw0=pw0, pb0=pb0, pw1=pw1, pb1=pb1, pw2=pw2, pb2=pb2,
        lw0x=lw0[:in_dim], lw0c=lw0[in_dim:], lb0=lb0,
        lw1=lw1, lb1=lb1, lw2=lw2, lb2=lb2,
        ow=ow, ob=ob,
    )


def mlpnet_reference(x, cond, params):
    """Pure-JAX reference of the PyTorch forward, for correctness checking."""
    def mish(v):
        return v * jnp.tanh(jnp.logaddexp(0.0, v))

    c = mish(cond @ params["pw0"] + params["pb0"])
    c = mish(c @ params["pw1"] + params["pb1"])
    c = c @ params["pw2"] + params["pb2"]
    h = jnp.concatenate([x, c], axis=-1)
    w0 = jnp.concatenate([params["lw0x"], params["lw0c"]], axis=0)
    h = mish(h @ w0 + params["lb0"])
    h = mish(h @ params["lw1"] + params["lb1"])
    h = mish(h @ params["lw2"] + params["lb2"])
    return jnp.tanh(h @ params["ow"] + params["ob"])


if __name__ == "__main__":
    # Small shapes consistent with the module: x is [batch, in_dim],
    # cond is [batch, cond_dim].
    batch, in_dim, out_dim, cond_dim, hidden_dim = 8, 16, 4, 8, 32

    key = jax.random.PRNGKey(0)
    kx, kc, kp = jax.random.split(key, 3)
    x = jax.random.normal(kx, (batch, in_dim), jnp.float32)
    cond = jax.random.normal(kc, (batch, cond_dim), jnp.float32)
    params = make_params(kp, in_dim, out_dim, cond_dim, hidden_dim)

    packed = pack_params(params)            # pad + pack once, reuse every forward
    out = jax.block_until_ready(mlpnet_forward(x, cond, packed))
    ref = jax.block_until_ready(mlpnet_reference(x, cond, params))

    assert out.shape == (batch, out_dim)
    # bf16 weight storage + approx-reciprocal mish => slightly looser tolerance
    # than exact f32 math (default-precision f32 dots already round through bf16
    # on the MXU, so the reference sees nearly identical rounding).
    assert jnp.allclose(out, ref, atol=5e-3, rtol=5e-3), "mismatch vs reference"

    print("KERNEL_OK")
</pallas_src>

<mosaic_0001>
module attributes {stable_mosaic.version = 11 : i64} {
  func.func @mlpnet_kernel(%arg0: i32, %arg1: memref<8x16xf32, #tpu.memory_space<vmem>>, %arg2: memref<8x8xf32, #tpu.memory_space<vmem>>, %arg3: memref<8x128xbf16, #tpu.memory_space<vmem>>, %arg4: memref<128x128xbf16, #tpu.memory_space<vmem>>, %arg5: memref<128x128xbf16, #tpu.memory_space<vmem>>, %arg6: memref<16x128xbf16, #tpu.memory_space<vmem>>, %arg7: memref<4x128x128xbf16, #tpu.memory_space<vmem>>, %arg8: memref<6x1x128xf32, #tpu.memory_space<vmem>>, %arg9: memref<1x128xf32, #tpu.memory_space<vmem>>, %arg10: memref<8x4xf32, #tpu.memory_space<vmem>>) attributes {dimension_semantics = [#tpu.dimension_semantics<parallel>], iteration_bounds = array<i64: 1>, scalar_prefetch = 0 : i64, scratch_operands = 0 : i64, tpu.core_type = #tpu.core_type<tc>, window_params = [{transform_indices = @transform_0, window_bounds = array<i64: 8, 16>}, {transform_indices = @transform_1, window_bounds = array<i64: 8, 8>}, {pipeline_mode = #tpu.pipeline_mode<synchronous>, transform_indices = @transform_2, window_bounds = array<i64: 8, 128>}, {pipeline_mode = #tpu.pipeline_mode<synchronous>, transform_indices = @transform_3, window_bounds = array<i64: 128, 128>}, {pipeline_mode = #tpu.pipeline_mode<synchronous>, transform_indices = @transform_4, window_bounds = array<i64: 128, 128>}, {pipeline_mode = #tpu.pipeline_mode<synchronous>, transform_indices = @transform_5, window_bounds = array<i64: 16, 128>}, {pipeline_mode = #tpu.pipeline_mode<synchronous>, transform_indices = @transform_6, window_bounds = array<i64: 4, 128, 128>}, {pipeline_mode = #tpu.pipeline_mode<synchronous>, transform_indices = @transform_7, window_bounds = array<i64: 6, 1, 128>}, {pipeline_mode = #tpu.pipeline_mode<synchronous>, transform_indices = @transform_8, window_bounds = array<i64: 1, 128>}, {transform_indices = @transform_9, window_bounds = array<i64: 8, 4>}]} {
    %c0 = arith.constant 0 : index
    %c0_0 = arith.constant 0 : index
    %0 = vector.load %arg2[%c0, %c0_0] : memref<8x8xf32, #tpu.memory_space<vmem>>, vector<8x8xf32>
    %c0_1 = arith.constant 0 : index
    %c0_2 = arith.constant 0 : index
    %1 = vector.load %arg3[%c0_1, %c0_2] : memref<8x128xbf16, #tpu.memory_space<vmem>>, vector<8x128xbf16>
    %2 = arith.truncf %0 : vector<8x8xf32> to vector<8x8xbf16>
    %cst = arith.constant dense<0.000000e+00> : vector<8x128xf32>
    %3 = tpu.matmul %2, %1, %cst {dimension_numbers = #tpu.dot_dimension_numbers<[1], [0], [0], [1], [0, 0, 1, 1], [], []>} : vector<8x8xbf16>, vector<8x128xbf16>, vector<8x128xf32> -> vector<8x128xf32>
    %c0_3 = arith.constant 0 : index
    %c0_4 = arith.constant 0 : index
    %c0_5 = arith.constant 0 : index
    %4 = vector.load %arg8[%c0_3, %c0_4, %c0_5] : memref<6x1x128xf32, #tpu.memory_space<vmem>>, vector<1x1x128xf32>
    %5 = vector.shape_cast %4 : vector<1x1x128xf32> to vector<1x128xf32>
    %6 = vector.broadcast %5 : vector<1x128xf32> to vector<8x128xf32>
    %7 = arith.addf %3, %6 : vector<8x128xf32>
    %cst_6 = arith.constant 2.000000e+01 : f32
    %8 = vector.broadcast %cst_6 : f32 to vector<8x128xf32>
    %9 = arith.minimumf %7, %8 : vector<8x128xf32>
    %10 = math.exp %9 : vector<8x128xf32>
    %cst_7 = arith.constant 1.000000e+00 : f32
    %11 = vector.broadcast %cst_7 : f32 to vector<8x128xf32>
    %12 = arith.addf %11, %10 : vector<8x128xf32>
    %cst_8 = arith.constant 1.000000e+00 : f32
    %13 = vector.broadcast %cst_8 : f32 to vector<8x128xf32>
    %14 = arith.addf %13, %10 : vector<8x128xf32>
    %15 = arith.mulf %12, %14 : vector<8x128xf32>
    %cst_9 = arith.constant 1.000000e+00 : f32
    %16 = vector.broadcast %cst_9 : f32 to vector<8x128xf32>
    %17 = arith.subf %15, %16 : vector<8x128xf32>
    %18 = arith.mulf %7, %17 : vector<8x128xf32>
    %cst_10 = arith.constant 1.000000e+00 : f32
    %19 = vector.broadcast %cst_10 : f32 to vector<8x128xf32>
    %20 = arith.addf %15, %19 : vector<8x128xf32>
    %21 = tpu.reciprocal %20 {approx = true} : vector<8x128xf32> -> vector<8x128xf32>
    %22 = arith.mulf %18, %21 : vector<8x128xf32>
    %c0_11 = arith.constant 0 : index
    %c0_12 = arith.constant 0 : index
    %23 = vector.load %arg4[%c0_11, %c0_12] : memref<128x128xbf16, #tpu.memory_space<vmem>>, vector<128x128xbf16>
    %24 = arith.truncf %22 : vector<8x128xf32> to vector<8x128xbf16>
    %cst_13 = arith.constant dense<0.000000e+00> : vector<8x128xf32>
    %25 = tpu.matmul %24, %23, %cst_13 {dimension_numbers = #tpu.dot_dimension_numbers<[1], [0], [0], [1], [0, 0, 1, 1], [], []>} : vector<8x128xbf16>, vector<128x128xbf16>, vector<8x128xf32> -> vector<8x128xf32>
    %c0_14 = arith.constant 0 : index
    %c0_15 = arith.constant 0 : index
    %26 = vector.load %arg9[%c0_14, %c0_15] : memref<1x128xf32, #tpu.memory_space<vmem>>, vector<1x128xf32>
    %27 = vector.broadcast %26 : vector<1x128xf32> to vector<8x128xf32>
    %28 = arith.addf %25, %27 : vector<8x128xf32>
    %cst_16 = arith.constant 2.000000e+01 : f32
    %29 = vector.broadcast %cst_16 : f32 to vector<8x128xf32>
    %30 = arith.minimumf %28, %29 : vector<8x128xf32>
    %31 = math.exp %30 : vector<8x128xf32>
    %cst_17 = arith.constant 1.000000e+00 : f32
    %32 = vector.broadcast %cst_17 : f32 to vector<8x128xf32>
    %33 = arith.addf %32, %31 : vector<8x128xf32>
    %cst_18 = arith.constant 1.000000e+00 : f32
    %34 = vector.broadcast %cst_18 : f32 to vector<8x128xf32>
    %35 = arith.addf %34, %31 : vector<8x128xf32>
    %36 = arith.mulf %33, %35 : vector<8x128xf32>
    %cst_19 = arith.constant 1.000000e+00 : f32
    %37 = vector.broadcast %cst_19 : f32 to vector<8x128xf32>
    %38 = arith.subf %36, %37 : vector<8x128xf32>
    %39 = arith.mulf %28, %38 : vector<8x128xf32>
    %cst_20 = arith.constant 1.000000e+00 : f32
    %40 = vector.broadcast %cst_20 : f32 to vector<8x128xf32>
    %41 = arith.addf %36, %40 : vector<8x128xf32>
    %42 = tpu.reciprocal %41 {approx = true} : vector<8x128xf32> -> vector<8x128xf32>
    %43 = arith.mulf %39, %42 : vector<8x128xf32>
    %c0_21 = arith.constant 0 : index
    %c0_22 = arith.constant 0 : index
    %44 = vector.load %arg5[%c0_21, %c0_22] : memref<128x128xbf16, #tpu.memory_space<vmem>>, vector<128x128xbf16>
    %45 = arith.truncf %43 : vector<8x128xf32> to vector<8x128xbf16>
    %cst_23 = arith.constant dense<0.000000e+00> : vector<8x128xf32>
    %46 = tpu.matmul %45, %44, %cst_23 {dimension_numbers = #tpu.dot_dimension_numbers<[1], [0], [0], [1], [0, 0, 1, 1], [], []>} : vector<8x128xbf16>, vector<128x128xbf16>, vector<8x128xf32> -> vector<8x128xf32>
    %c1 = arith.constant 1 : index
    %c0_24 = arith.constant 0 : index
    %c0_25 = arith.constant 0 : index
    %47 = vector.load %arg8[%c1, %c0_24, %c0_25] : memref<6x1x128xf32, #tpu.memory_space<vmem>>, vector<1x1x128xf32>
    %48 = vector.shape_cast %47 : vector<1x1x128xf32> to vector<1x128xf32>
    %49 = vector.broadcast %48 : vector<1x128xf32> to vector<8x128xf32>
    %50 = arith.addf %46, %49 : vector<8x128xf32>
    %c0_26 = arith.constant 0 : index
    %c0_27 = arith.constant 0 : index
    %51 = vector.load %arg1[%c0_26, %c0_27] : memref<8x16xf32, #tpu.memory_space<vmem>>, vector<8x16xf32>
    %c0_28 = arith.constant 0 : index
    %c0_29 = arith.constant 0 : index
    %52 = vector.load %arg6[%c0_28, %c0_29] : memref<16x128xbf16, #tpu.memory_space<vmem>>, vector<16x128xbf16>
    %53 = arith.truncf %51 : vector<8x16xf32> to vector<8x16xbf16>
    %cst_30 = arith.constant dense<0.000000e+00> : vector<8x128xf32>
    %54 = tpu.matmul %53, %52, %cst_30 {dimension_numbers = #tpu.dot_dimension_numbers<[1], [0], [0], [1], [0, 0, 1, 1], [], []>} : vector<8x16xbf16>, vector<16x128xbf16>, vector<8x128xf32> -> vector<8x128xf32>
    %c0_31 = arith.constant 0 : index
    %c0_32 = arith.constant 0 : index
    %c0_33 = arith.constant 0 : index
    %55 = vector.load %arg7[%c0_31, %c0_32, %c0_33] : memref<4x128x128xbf16, #tpu.memory_space<vmem>>, vector<1x128x128xbf16>
    %56 = vector.shape_cast %55 : vector<1x128x128xbf16> to vector<128x128xbf16>
    %57 = arith.truncf %50 : vector<8x128xf32> to vector<8x128xbf16>
    %cst_34 = arith.constant dense<0.000000e+00> : vector<8x128xf32>
    %58 = tpu.matmul %57, %56, %cst_34 {dimension_numbers = #tpu.dot_dimension_numbers<[1], [0], [0], [1], [0, 0, 1, 1], [], []>} : vector<8x128xbf16>, vector<128x128xbf16>, vector<8x128xf32> -> vector<8x128xf32>
    %59 = arith.addf %54, %58 : vector<8x128xf32>
    %c2 = arith.constant 2 : index
    %c0_35 = arith.constant 0 : index
    %c0_36 = arith.constant 0 : index
    %60 = vector.load %arg8[%c2, %c0_35, %c0_36] : memref<6x1x128xf32, #tpu.memory_space<vmem>>, vector<1x1x128xf32>
    %61 = vector.shape_cast %60 : vector<1x1x128xf32> to vector<1x128xf32>
    %62 = vector.broadcast %61 : vector<1x128xf32> to vector<8x128xf32>
    %63 = arith.addf %59, %62 : vector<8x128xf32>
    %cst_37 = arith.constant 2.000000e+01 : f32
    %64 = vector.broadcast %cst_37 : f32 to vector<8x128xf32>
    %65 = arith.minimumf %63, %64 : vector<8x128xf32>
    %66 = math.exp %65 : vector<8x128xf32>
    %cst_38 = arith.constant 1.000000e+00 : f32
    %67 = vector.broadcast %cst_38 : f32 to vector<8x128xf32>
    %68 = arith.addf %67, %66 : vector<8x128xf32>
    %cst_39 = arith.constant 1.000000e+00 : f32
    %69 = vector.broadcast %cst_39 : f32 to vector<8x128xf32>
    %70 = arith.addf %69, %66 : vector<8x128xf32>
    %71 = arith.mulf %68, %70 : vector<8x128xf32>
    %cst_40 = arith.constant 1.000000e+00 : f32
    %72 = vector.broadcast %cst_40 : f32 to vector<8x128xf32>
    %73 = arith.subf %71, %72 : vector<8x128xf32>
    %74 = arith.mulf %63, %73 : vector<8x128xf32>
    %cst_41 = arith.constant 1.000000e+00 : f32
    %75 = vector.broadcast %cst_41 : f32 to vector<8x128xf32>
    %76 = arith.addf %71, %75 : vector<8x128xf32>
    %77 = tpu.reciprocal %76 {approx = true} : vector<8x128xf32> -> vector<8x128xf32>
    %78 = arith.mulf %74, %77 : vector<8x128xf32>
    %c1_42 = arith.constant 1 : index
    %c0_43 = arith.constant 0 : index
    %c0_44 = arith.constant 0 : index
    %79 = vector.load %arg7[%c1_42, %c0_43, %c0_44] : memref<4x128x128xbf16, #tpu.memory_space<vmem>>, vector<1x128x128xbf16>
    %80 = vector.shape_cast %79 : vector<1x128x128xbf16> to vector<128x128xbf16>
    %81 = arith.truncf %78 : vector<8x128xf32> to vector<8x128xbf16>
    %cst_45 = arith.constant dense<0.000000e+00> : vector<8x128xf32>
    %82 = tpu.matmul %81, %80, %cst_45 {dimension_numbers = #tpu.dot_dimension_numbers<[1], [0], [0], [1], [0, 0, 1, 1], [], []>} : vector<8x128xbf16>, vector<128x128xbf16>, vector<8x128xf32> -> vector<8x128xf32>
    %c3 = arith.constant 3 : index
    %c0_46 = arith.constant 0 : index
    %c0_47 = arith.constant 0 : index
    %83 = vector.load %arg8[%c3, %c0_46, %c0_47] : memref<6x1x128xf32, #tpu.memory_space<vmem>>, vector<1x1x128xf32>
    %84 = vector.shape_cast %83 : vector<1x1x128xf32> to vector<1x128xf32>
    %85 = vector.broadcast %84 : vector<1x128xf32> to vector<8x128xf32>
    %86 = arith.addf %82, %85 : vector<8x128xf32>
    %cst_48 = arith.constant 2.000000e+01 : f32
    %87 = vector.broadcast %cst_48 : f32 to vector<8x128xf32>
    %88 = arith.minimumf %86, %87 : vector<8x128xf32>
    %89 = math.exp %88 : vector<8x128xf32>
    %cst_49 = arith.constant 1.000000e+00 : f32
    %90 = vector.broadcast %cst_49 : f32 to vector<8x128xf32>
    %91 = arith.addf %90, %89 : vector<8x128xf32>
    %cst_50 = arith.constant 1.000000e+00 : f32
    %92 = vector.broadcast %cst_50 : f32 to vector<8x128xf32>
    %93 = arith.addf %92, %89 : vector<8x128xf32>
    %94 = arith.mulf %91, %93 : vector<8x128xf32>
    %cst_51 = arith.constant 1.000000e+00 : f32
    %95 = vector.broadcast %cst_51 : f32 to vector<8x128xf32>
    %96 = arith.subf %94, %95 : vector<8x128xf32>
    %97 = arith.mulf %86, %96 : vector<8x128xf32>
    %cst_52 = arith.constant 1.000000e+00 : f32
    %98 = vector.broadcast %cst_52 : f32 to vector<8x128xf32>
    %99 = arith.addf %94, %98 : vector<8x128xf32>
    %100 = tpu.reciprocal %99 {approx = true} : vector<8x128xf32> -> vector<8x128xf32>
    %101 = arith.mulf %97, %100 : vector<8x128xf32>
    %c2_53 = arith.constant 2 : index
    %c0_54 = arith.constant 0 : index
    %c0_55 = arith.constant 0 : index
    %102 = vector.load %arg7[%c2_53, %c0_54, %c0_55] : memref<4x128x128xbf16, #tpu.memory_space<vmem>>, vector<1x128x128xbf16>
    %103 = vector.shape_cast %102 : vector<1x128x128xbf16> to vector<128x128xbf16>
    %104 = arith.truncf %101 : vector<8x128xf32> to vector<8x128xbf16>
    %cst_56 = arith.constant dense<0.000000e+00> : vector<8x128xf32>
    %105 = tpu.matmul %104, %103, %cst_56 {dimension_numbers = #tpu.dot_dimension_numbers<[1], [0], [0], [1], [0, 0, 1, 1], [], []>} : vector<8x128xbf16>, vector<128x128xbf16>, vector<8x128xf32> -> vector<8x128xf32>
    %c4 = arith.constant 4 : index
    %c0_57 = arith.constant 0 : index
    %c0_58 = arith.constant 0 : index
    %106 = vector.load %arg8[%c4, %c0_57, %c0_58] : memref<6x1x128xf32, #tpu.memory_space<vmem>>, vector<1x1x128xf32>
    %107 = vector.shape_cast %106 : vector<1x1x128xf32> to vector<1x128xf32>
    %108 = vector.broadcast %107 : vector<1x128xf32> to vector<8x128xf32>
    %109 = arith.addf %105, %108 : vector<8x128xf32>
    %cst_59 = arith.constant 2.000000e+01 : f32
    %110 = vector.broadcast %cst_59 : f32 to vector<8x128xf32>
    %111 = arith.minimumf %109, %110 : vector<8x128xf32>
    %112 = math.exp %111 : vector<8x128xf32>
    %cst_60 = arith.constant 1.000000e+00 : f32
    %113 = vector.broadcast %cst_60 : f32 to vector<8x128xf32>
    %114 = arith.addf %113, %112 : vector<8x128xf32>
    %cst_61 = arith.constant 1.000000e+00 : f32
    %115 = vector.broadcast %cst_61 : f32 to vector<8x128xf32>
    %116 = arith.addf %115, %112 : vector<8x128xf32>
    %117 = arith.mulf %114, %116 : vector<8x128xf32>
    %cst_62 = arith.constant 1.000000e+00 : f32
    %118 = vector.broadcast %cst_62 : f32 to vector<8x128xf32>
    %119 = arith.subf %117, %118 : vector<8x128xf32>
    %120 = arith.mulf %109, %119 : vector<8x128xf32>
    %cst_63 = arith.constant 1.000000e+00 : f32
    %121 = vector.broadcast %cst_63 : f32 to vector<8x128xf32>
    %122 = arith.addf %117, %121 : vector<8x128xf32>
    %123 = tpu.reciprocal %122 {approx = true} : vector<8x128xf32> -> vector<8x128xf32>
    %124 = arith.mulf %120, %123 : vector<8x128xf32>
    %c3_64 = arith.constant 3 : index
    %c0_65 = arith.constant 0 : index
    %c0_66 = arith.constant 0 : index
    %125 = vector.load %arg7[%c3_64, %c0_65, %c0_66] : memref<4x128x128xbf16, #tpu.memory_space<vmem>>, vector<1x128x128xbf16>
    %126 = vector.shape_cast %125 : vector<1x128x128xbf16> to vector<128x128xbf16>
    %127 = arith.truncf %124 : vector<8x128xf32> to vector<8x128xbf16>
    %cst_67 = arith.constant dense<0.000000e+00> : vector<8x128xf32>
    %128 = tpu.matmul %127, %126, %cst_67 {dimension_numbers = #tpu.dot_dimension_numbers<[1], [0], [0], [1], [0, 0, 1, 1], [], []>} : vector<8x128xbf16>, vector<128x128xbf16>, vector<8x128xf32> -> vector<8x128xf32>
    %c5 = arith.constant 5 : index
    %c0_68 = arith.constant 0 : index
    %c0_69 = arith.constant 0 : index
    %129 = vector.load %arg8[%c5, %c0_68, %c0_69] : memref<6x1x128xf32, #tpu.memory_space<vmem>>, vector<1x1x128xf32>
    %130 = vector.shape_cast %129 : vector<1x1x128xf32> to vector<1x128xf32>
    %131 = vector.broadcast %130 : vector<1x128xf32> to vector<8x128xf32>
    %132 = arith.addf %128, %131 : vector<8x128xf32>
    %133 = vector.extract_strided_slice %132 {offsets = [0, 0], sizes = [8, 4], strides = [1, 1]} : vector<8x128xf32> to vector<8x4xf32>
    %134 = math.tanh %133 : vector<8x4xf32>
    %c0_70 = arith.constant 0 : index
    %c0_71 = arith.constant 0 : index
    %135 = vector.load %arg10[%c0_70, %c0_71] : memref<8x4xf32, #tpu.memory_space<vmem>>, vector<8x4xf32>
    tpu.vector_store %arg10[%c0_70, %c0_71], %134 {strides = array<i32>} : memref<8x4xf32, #tpu.memory_space<vmem>>, vector<8x4xf32>,
    return
  }
  func.func @transform_0(%arg0: i32) -> (i32, i32) {
    %c0_i32 = arith.constant 0 : i32
    %c0_i32_0 = arith.constant 0 : i32
    return %arg0, %c0_i32 : i32, i32
  }
  func.func @transform_1(%arg0: i32) -> (i32, i32) {
    %c0_i32 = arith.constant 0 : i32
    %c0_i32_0 = arith.constant 0 : i32
    return %arg0, %c0_i32 : i32, i32
  }
  func.func @transform_2(%arg0: i32) -> (i32, i32) {
    %c0_i32 = arith.constant 0 : i32
    %c0_i32_0 = arith.constant 0 : i32
    %c0_i32_1 = arith.constant 0 : i32
    return %c0_i32, %c0_i32_0 : i32, i32
  }
  func.func @transform_3(%arg0: i32) -> (i32, i32) {
    %c0_i32 = arith.constant 0 : i32
    %c0_i32_0 = arith.constant 0 : i32
    %c0_i32_1 = arith.constant 0 : i32
    return %c0_i32, %c0_i32_0 : i32, i32
  }
  func.func @transform_4(%arg0: i32) -> (i32, i32) {
    %c0_i32 = arith.constant 0 : i32
    %c0_i32_0 = arith.constant 0 : i32
    %c0_i32_1 = arith.constant 0 : i32
    return %c0_i32, %c0_i32_0 : i32, i32
  }
  func.func @transform_5(%arg0: i32) -> (i32, i32) {
    %c0_i32 = arith.constant 0 : i32
    %c0_i32_0 = arith.constant 0 : i32
    %c0_i32_1 = arith.constant 0 : i32
    return %c0_i32, %c0_i32_0 : i32, i32
  }
  func.func @transform_6(%arg0: i32) -> (i32, i32, i32) {
    %c0_i32 = arith.constant 0 : i32
    %c0_i32_0 = arith.constant 0 : i32
    %c0_i32_1 = arith.constant 0 : i32
    %c0_i32_2 = arith.constant 0 : i32
    return %c0_i32, %c0_i32_0, %c0_i32_1 : i32, i32, i32
  }
  func.func @transform_7(%arg0: i32) -> (i32, i32, i32) {
    %c0_i32 = arith.constant 0 : i32
    %c0_i32_0 = arith.constant 0 : i32
    %c0_i32_1 = arith.constant 0 : i32
    %c0_i32_2 = arith.constant 0 : i32
    return %c0_i32, %c0_i32_0, %c0_i32_1 : i32, i32, i32
  }
  func.func @transform_8(%arg0: i32) -> (i32, i32) {
    %c0_i32 = arith.constant 0 : i32
    %c0_i32_0 = arith.constant 0 : i32
    %c0_i32_1 = arith.constant 0 : i32
    return %c0_i32, %c0_i32_0 : i32, i32
  }
  func.func @transform_9(%arg0: i32) -> (i32, i32) {
    %c0_i32 = arith.constant 0 : i32
    %c0_i32_0 = arith.constant 0 : i32
    return %arg0, %c0_i32 : i32, i32
  }
}

</mosaic_0001>

<bundles_post_ra>
// kernel: tpu_custom_call.1
= control target key start
LH: loop header
LB: loop body
LE: loop exit
PB: predicated region body
PF: predicated region fallthrough
CT: control target
= control target key end

     0   :  { %14 = vsyncpa [#allocation3], 0  ;;  %s1340_s0 = inlined_call_operand.hbm [shape: f32[8,16], index: 0, kind: input, shape index: {}]   ;;  %s1341_s1 = inlined_call_operand.hbm [shape: f32[8,8], index: 1, kind: input, shape index: {}]   ;;  %s1342_s2 = inlined_call_operand.hbm [shape: bf16[8,128], index: 2, kind: input, shape index: {}]   ;;  %s1343_s3 = inlined_call_operand.hbm [shape: bf16[128,128], index: 3, kind: input, shape index: {}]   ;;  %s1344_s4 = inlined_call_operand.hbm [shape: bf16[128,128], index: 4, kind: input, shape index: {}]   ;;  %s1345_s5 = inlined_call_operand.hbm [shape: bf16[16,128], index: 5, kind: input, shape index: {}]   ;;  %s1346_s6 = inlined_call_operand.hbm [shape: bf16[4,128,128], index: 6, kind: input, shape index: {}]   ;;  %s1347_s7 = inlined_call_operand.vmem [shape: f32[6,1,128], index: 7, kind: input, shape index: {}]   ;;  %s1348_s8 = inlined_call_operand.vmem [shape: f32[1,128], index: 8, kind: input, shape index: {}]   ;;  %s1349_s9 = inlined_call_operand.vmem [shape: f32[8,4], index: 9, kind: output, shape index: {}]  }
   0x1   :  { %15 = vsyncpa [#allocation5], 0 }
   0x2   :  { %16 = vsyncpa [#allocation8], 0  ;;  %s34_s11 = sshll.u32 %s1341_s1, 4  ;;  %s35_s11 = int_to_ptr.hbm [resolvable:$true] %s34_s11 }
   0x3   :  { %17 = vsyncpa [#allocation11], 0  ;;  %s1224_s12 = smov [#allocation4]   ;;  %s55_s16 = sshll.u32 %s1343_s3, 4  ;;  %s56_s16 = int_to_ptr.hbm [resolvable:$true] %s55_s16 }
   0x4   :  { %s36_s13 = sshll.u32 %s1224_s12, 4  ;;  %s1225_s17 = smov [#allocation7]   ;;  %s37_s13 = int_to_ptr.vmem [resolvable:$true] %s36_s13 }
   0x5   :  { %39 = dma.hbm_to_vmem [thread:$0]  %s35_s11, 128, %s37_s13, [#allocation5]  }
   0x6   :  { %s57_s18 = sshll.u32 %s1225_s17, 4  ;;  %s1226_s19 = smov 64   ;;  %s58_s18 = int_to_ptr.vmem [resolvable:$true] %s57_s18 }
   0x7   :  { %s1227_s20 = smov 4   ;;  %s81_s22 = sshll.u32 %s1345_s5, 4  ;;  %s82_s22 = int_to_ptr.hbm [resolvable:$true] %s81_s22 }
   0x8   :  { %63 = dma.hbm_to_vmem [thread:$0]  %s56_s16, 1024, %s58_s18, [#allocation8], %s1226_s19, %s1226_s19, %s1227_s20  }
   0x9   :  { %s1228_s23 = smov [#allocation10]   ;;  %s23_s26 = sshll.u32 %s1340_s0, 4  ;;  %s24_s26 = int_to_ptr.hbm [resolvable:$true] %s23_s26 }
   0xa   :  { %s83_s24 = sshll.u32 %s1228_s23, 4  ;;  %s1229_s27 = smov [#allocation2]   ;;  %s84_s24 = int_to_ptr.vmem [resolvable:$true] %s83_s24 }
   0xb   :  { %89 = dma.hbm_to_vmem [thread:$0]  %s82_s22, 128, %s84_s24, [#allocation11], %s1226_s19, %s1226_s19, %s1227_s20  }
   0xc   :  { %s25_s28 = sshll.u32 %s1229_s27, 4  ;;  %s45_s10 = sshll.u32 %s1342_s2, 4  ;;  %s26_s28 = int_to_ptr.vmem [resolvable:$true] %s25_s28  ;;  %s46_s10 = int_to_ptr.hbm [resolvable:$true] %s45_s10 }
   0xd   :  { %28 = dma.hbm_to_vmem [thread:$0]  %s24_s26, 128, %s26_s28, [#allocation3]  }
   0xe   :  { %s68_s12 = sshll.u32 %s1344_s4, 4  ;;  %s1230_s13 = smov [#allocation6]   ;;  %s69_s12 = int_to_ptr.hbm [resolvable:$true] %s68_s12 }
   0xf   :  { %s47_s0 = sshll.u32 %s1230_s13, 4  ;;  %s1231_s14 = smov [#allocation9]   ;;  %s48_s0 = int_to_ptr.vmem [resolvable:$true] %s47_s0 }
  0x10   :  { %50 = dma.hbm_to_vmem [thread:$0]  %s46_s10, 64, %s48_s0, [#allocation5]  }
  0x11   :  { %s70_s15 = sshll.u32 %s1231_s14, 4  ;;  %s94_s18 = sshll.u32 %s1346_s6, 4  ;;  %s71_s15 = int_to_ptr.vmem [resolvable:$true] %s70_s15  ;;  %s95_s18 = int_to_ptr.hbm [resolvable:$true] %s94_s18 }
  0x12   :  { %76 = dma.hbm_to_vmem [thread:$0]  %s69_s12, 1024, %s71_s15, [#allocation8], %s1226_s19, %s1226_s19, %s1227_s20  }
  0x13   :  { %s1232_s2 = smov [#allocation12]  }
  0x14   :  { %s96_s1 = sshll.u32 %s1232_s2, 4  ;;  %s97_s1 = int_to_ptr.vmem [resolvable:$true] %s96_s1 }
  0x15   :  { %102 = dma.hbm_to_vmem [thread:$0]  %s95_s18, 4096, %s97_s1, [#allocation11], %s1226_s19, %s1226_s19, %s1227_s20  }
  0x16   :  { %1216 = dma.done.wait [#allocation3], 128  }
  0x17   :  { %1217 = vsyncadd [#allocation3], 4294967168 }
  0x18   :  { %1218 = dma.done.wait [#allocation5], 192  }
  0x19   :  { %1219 = vsyncadd [#allocation5], 4294967104 }
  0x1a   :  { %1220 = dma.done.wait [#allocation8], 2048  }
  0x1b   :  { %1221 = vsyncadd [#allocation8], 4294965248 }
  0x1c   :  { %1222 = dma.done.wait [#allocation11], 4224  }
  0x1d   :  { %1223 = vsyncadd [#allocation11], 4294963072  ;;  %vm147_vm0 = vcmask 1043456   ;;  %v137_v0 = vld [vmem:[#allocation6] sm:$0xf]  ;;  %v136_v1 = vld [vmem:[#allocation4] sm:$0xff] }
  0x1e   :  { %v149_v2 = vsel %vm147_vm0, %v137_v0, 0  ;;  %v138_v3 = vpack.c.bf16 %v136_v1, %v136_v1  ;;  %vm143_vm1 = vcmask 64512   ;;  %v968_v4 = vld [vmem:[#allocation7 + $0x38] sm:$0xff]  ;;  %v967_v5 = vld [vmem:[#allocation7 + $0x30] sm:$0xff]  ;;  %v966_v6 = vld [vmem:[#allocation7 + $0x28] sm:$0xff]  ;;  %vm437_vm2 = vcmask 130048  }
  0x1f   :  { %158 = vmatpush.bf16.msra.mxu0 %v149_v2  ;;  %243 = vmatpush.bf16.msra.mxu1 %v968_v4  ;;  %v965_v7 = vld [vmem:[#allocation7 + $0x20] sm:$0xff]  ;;  %v964_v8 = vld [vmem:[#allocation7 + $0x18] sm:$0xff]  ;;  %v963_v9 = vld [vmem:[#allocation7 + $0x10] sm:$0xff]  ;;  %vm743_vm3 = vcmask 31744  }
  0x20   :  { %v962_v10 = vld [vmem:[#allocation7 + $0x8] sm:$0xff]  ;;  %v961_v11 = vld [vmem:[#allocation7] sm:$0xff]  ;;  %v976_v27 = vld [vmem:[#allocation9 + $0x38] sm:$0xff] }
  0x21   :  { %v1019_v12 = vld [vmem:[%s1347_s7] ss:$0 sm:$0xff]  ;;  %336 = vmatpush.bf16.msra.mxu2 %v976_v27  ;;  %v975_v28 = vld [vmem:[#allocation9 + $0x30] sm:$0xff]  ;;  %v973_v30 = vld [vmem:[#allocation9 + $0x20] sm:$0xff] }
  0x22   :  { %753 = vmatmul.msk.bf16.vlgmr.msra.gmra.mxu0 %vm143_vm1, %v138_v3  ;;  %v974_v29 = vld [vmem:[#allocation9 + $0x28] sm:$0xff]  ;;  %v972_v31 = vld [vmem:[#allocation9 + $0x18] sm:$0xff]  ;;  %v971_v32 = vld [vmem:[#allocation9 + $0x10] sm:$0xff] }
  0x23   :  { %244 = vmatpush.bf16.msra.mxu1 %v967_v5  ;;  %v970_v33 = vld [vmem:[#allocation9 + $0x8] sm:$0xff]  ;;  %v969_v34 = vld [vmem:[#allocation9] sm:$0xff]  ;;  %v984_v39 = vld [vmem:[#allocation12 + $0x30] sm:$0xff] }
  0x24   :  { %v1020_v35 = vld [vmem:[%s1348_s8] ss:$0 sm:$0xff]  ;;  %v985_v36 = vld [vmem:[#allocation12 + $0x38] sm:$0xff]  ;;  %v983_v43 = vld [vmem:[#allocation12 + $0x28] sm:$0xff] }
  0x25   :  { %337 = vmatpush.bf16.msra.mxu2 %v975_v28  ;;  %418 = vmatpush.bf16.msra.mxu3 %v985_v36  ;;  %v977_v40 = vld [vmem:[#allocation10] sm:$0xff]  ;;  %v982_v45 = vld [vmem:[#allocation12 + $0x20] sm:$0xff]  ;;  %v980_v50 = vld [vmem:[#allocation12 + $0x10] sm:$0xff] }
  0x26   :  { %448 = vmatpush.bf16.msrb.mxu0 %v977_v40  ;;  %v981_v47 = vld [vmem:[#allocation12 + $0x18] sm:$0xff]  ;;  %v979_v53 = vld [vmem:[#allocation12 + $0x8] sm:$0xff]  ;;  %v978_v58 = vld [vmem:[#allocation12] sm:$0xff] }
  0x27   :  { %245 = vmatpush.bf16.msra.mxu1 %v966_v6  ;;  %v349_v59 = vld [vmem:[#allocation2] sm:$0xff]  ;;  %v993_v4 = vld [vmem:[#allocation12 + $0x78] sm:$0xff]  ;;  %v992_v5 = vld [vmem:[#allocation12 + $0x70] sm:$0xff] }
  0x28   :  { %v352_v60 = vpack.c.bf16 %v349_v59, %v349_v59  ;;  %v1021_v61 = vld [vmem:[%s1347_s7 + $0x1] ss:$0 sm:$0xff]  ;;  %v991_v6 = vld [vmem:[#allocation12 + $0x68] sm:$0xff]  ;;  %v1001_v28 = vld [vmem:[#allocation12 + $0xb8] sm:$0xff] }
  0x29   :  { %338 = vmatpush.bf16.msra.mxu2 %v974_v29  ;;  %419 = vmatpush.bf16.msra.mxu3 %v984_v39  ;;  %v1000_v29 = vld [vmem:[#allocation12 + $0xb0] sm:$0xff]  ;;  %v1023_v36 = vld [vmem:[%s1347_s7 + $0x3] ss:$0 sm:$0xff]  ;;  %v1024_v59 = vld [vmem:[%s1347_s7 + $0x4] ss:$0 sm:$0xff] }
  0x2a   :  { %541 = vmatpush.bf16.msra.mxu0 %v993_v4 }
  0x2b   :  { %246 = vmatpush.bf16.msra.mxu1 %v965_v7  ;;  %v990_v7 = vld [vmem:[#allocation12 + $0x60] sm:$0xff] }
  0x2d   :  { %339 = vmatpush.bf16.msra.mxu2 %v973_v30  ;;  %420 = vmatpush.bf16.msra.mxu3 %v983_v43  ;;  %v999_v30 = vld [vmem:[#allocation12 + $0xa8] sm:$0xff] }
  0x2e   :  { %542 = vmatpush.bf16.msra.mxu0 %v992_v5 }
  0x2f   :  { %247 = vmatpush.bf16.msra.mxu1 %v964_v8  ;;  %v989_v8 = vld [vmem:[#allocation12 + $0x58] sm:$0xff] }
  0x31   :  { %340 = vmatpush.bf16.msra.mxu2 %v972_v31  ;;  %421 = vmatpush.bf16.msra.mxu3 %v982_v45  ;;  %v998_v31 = vld [vmem:[#allocation12 + $0xa0] sm:$0xff] }
  0x32   :  { %857 = vmatmul.msk.bf16.vlgmr.msrb.gmra.mxu0 %vm437_vm2, %v352_v60 }
  0x33   :  { %248 = vmatpush.bf16.msra.mxu1 %v963_v9  ;;  %543 = vmatpush.bf16.msra.mxu0 %v991_v6  ;;  %v988_v9 = vld [vmem:[#allocation12 + $0x50] sm:$0xff] }
  0x35   :  { %341 = vmatpush.bf16.msra.mxu2 %v971_v32  ;;  %422 = vmatpush.bf16.msra.mxu3 %v981_v47  ;;  %v997_v32 = vld [vmem:[#allocation12 + $0x98] sm:$0xff] }
  0x37   :  { %249 = vmatpush.bf16.msra.mxu1 %v962_v10  ;;  %544 = vmatpush.bf16.msra.mxu0 %v990_v7  ;;  %v987_v10 = vld [vmem:[#allocation12 + $0x48] sm:$0xff] }
  0x39   :  { %342 = vmatpush.bf16.msra.mxu2 %v970_v33  ;;  %423 = vmatpush.bf16.msra.mxu3 %v980_v50  ;;  %v996_v33 = vld [vmem:[#allocation12 + $0x90] sm:$0xff] }
  0x3b   :  { %250 = vmatpush.bf16.msra.mxu1 %v961_v11  ;;  %545 = vmatpush.bf16.msra.mxu0 %v989_v8  ;;  %v986_v11 = vld [vmem:[#allocation12 + $0x40] sm:$0xff] }
  0x3d   :  { %343 = vmatpush.bf16.msra.mxu2 %v969_v34  ;;  %424 = vmatpush.bf16.msra.mxu3 %v979_v53  ;;  %v995_v34 = vld [vmem:[#allocation12 + $0x88] sm:$0xff] }
  0x3e   :  { %v1007_v53 = vld [vmem:[#allocation12 + $0xe8] sm:$0xff] }
  0x3f   :  { %546 = vmatpush.bf16.msra.mxu0 %v988_v9  ;;  %635 = vmatpush.bf16.msrb.mxu1 %v1001_v28 }
  0x41   :  { %425 = vmatpush.bf16.msra.mxu3 %v978_v58  ;;  %v1002_v58 = vld [vmem:[#allocation12 + $0xc0] sm:$0xff] }
  0x43   :  { %547 = vmatpush.bf16.msra.mxu0 %v987_v10  ;;  %636 = vmatpush.bf16.msrb.mxu1 %v1000_v29  ;;  %v1025_v10 = vld [vmem:[%s1347_s7 + $0x5] ss:$0 sm:$0xff] }
  0x47   :  { %548 = vmatpush.bf16.msra.mxu0 %v986_v11  ;;  %637 = vmatpush.bf16.msrb.mxu1 %v999_v30 }
  0x4b   :  { %638 = vmatpush.bf16.msrb.mxu1 %v998_v31 }
  0x4f   :  { %639 = vmatpush.bf16.msrb.mxu1 %v997_v32 }
  0x53   :  { %640 = vmatpush.bf16.msrb.mxu1 %v996_v33 }
  0x57   :  { %641 = vmatpush.bf16.msrb.mxu1 %v995_v34 }
  0x9f   :  { %v160_v13 = vpop.f32.mrf.mxu0 }
  0xa0   :  { %v161_v14 = vadd.f32 %v1019_v12, %v160_v13  ;;  %v1022_v12 = vld [vmem:[%s1347_s7 + $0x2] ss:$0 sm:$0xff] }
  0xa2   :  { %v164_v15 = vmin.f32 %v161_v14, 20.0 }
  0xa4   :  { %v165_v16 = vmul.f32 1.442695, %v164_v15 }
  0xa6   :  { %1026 = vpow2.f32 %v165_v16 }
  0xa7   :  { %v162_v17 = vpop.f32.mrf.mxu0 }
  0xac   :  { %v1027_v18 = vpop.eup %1026 }
  0xad   :  { %v167_v19 = vadd.f32 1.0, %v1027_v18 }
  0xaf   :  { %v168_v20 = vmul.f32 %v167_v19, %v167_v19  ;;  %v450_v2 = vpop.f32.mrf.mxu0 }
  0xb1   :  { %v171_v21 = vadd.f32 1.0, %v168_v20  ;;  %v754_v22 = vadd.f32 -1.0, %v168_v20 }
  0xb3   :  { %1028 = vrcp.f32 %v171_v21  ;;  %v170_v23 = vmul.f32 %v754_v22, %v161_v14 }
  0xb7   :  { %v452_v3 = vpop.f32.mrf.mxu0 }
  0xb9   :  { %v1029_v24 = vpop.eup %1028 }
  0xba   :  { %v173_v25 = vmul.f32 %v1029_v24, %v170_v23 }
  0xbc   :  { %v190_v26 = vpack.c.bf16 %v173_v25, %v173_v25 }
  0xbe   :  { %251 = vmatmul.bf16.vlgmr.msra.gmra.mxu1 %v190_v26 }
 0x13b   :  { %v252_v37 = vpop.f32.mrf.mxu1 }
 0x13c   :  { %v253_v38 = vadd.f32 %v1020_v35, %v252_v37  ;;  %v994_v35 = vld [vmem:[#allocation12 + $0x80] sm:$0xff] }
 0x13d   :  { %642 = vmatpush.bf16.msrb.mxu1 %v994_v35 }
 0x13e   :  { %v256_v41 = vmin.f32 %v253_v38, 20.0 }
 0x140   :  { %v257_v42 = vmul.f32 1.442695, %v256_v41 }
 0x142   :  { %1030 = vpow2.f32 %v257_v42 }
 0x143   :  { %v254_v44 = vpop.f32.mrf.mxu1 }
 0x148   :  { %v1031_v46 = vpop.eup %1030 }
 0x149   :  { %v259_v48 = vadd.f32 1.0, %v1031_v46 }
 0x14b   :  { %v260_v49 = vmul.f32 %v259_v48, %v259_v48 }
 0x14d   :  { %v263_v51 = vadd.f32 1.0, %v260_v49  ;;  %v787_v52 = vadd.f32 -1.0, %v260_v49 }
 0x14f   :  { %1032 = vrcp.f32 %v263_v51  ;;  %v262_v54 = vmul.f32 %v787_v52, %v253_v38  ;;  %v1009_v51 = vld [vmem:[#allocation12 + $0xf8] sm:$0xff]  ;;  %v1008_v52 = vld [vmem:[#allocation12 + $0xf0] sm:$0xff] }
 0x150   :  { %729 = vmatpush.bf16.msrb.mxu2 %v1009_v51 }
 0x154   :  { %730 = vmatpush.bf16.msrb.mxu2 %v1008_v52 }
 0x155   :  { %v1033_v55 = vpop.eup %1032 }
 0x156   :  { %v265_v56 = vmul.f32 %v1033_v55, %v262_v54  ;;  %v1006_v54 = vld [vmem:[#allocation12 + $0xe0] sm:$0xff]  ;;  %v1005_v55 = vld [vmem:[#allocation12 + $0xd8] sm:$0xff] }
 0x158   :  { %v282_v57 = vpack.c.bf16 %v265_v56, %v265_v56  ;;  %731 = vmatpush.bf16.msrb.mxu2 %v1007_v53  ;;  %v1004_v56 = vld [vmem:[#allocation12 + $0xd0] sm:$0xff] }
 0x15a   :  { %344 = vmatmul.bf16.vlgmr.msra.gmra.mxu2 %v282_v57  ;;  %v1003_v57 = vld [vmem:[#allocation12 + $0xc8] sm:$0xff] }
 0x15c   :  { %732 = vmatpush.bf16.msrb.mxu2 %v1006_v54 }
 0x160   :  { %733 = vmatpush.bf16.msrb.mxu2 %v1005_v55 }
 0x164   :  { %734 = vmatpush.bf16.msrb.mxu2 %v1004_v56 }
 0x168   :  { %735 = vmatpush.bf16.msrb.mxu2 %v1003_v57 }
 0x16c   :  { %736 = vmatpush.bf16.msrb.mxu2 %v1002_v58 }
 0x1dd   :  { %v345_v62 = vpop.f32.mrf.mxu2 }
 0x1de   :  { %v346_v63 = vadd.f32 %v1021_v61, %v345_v62 }
 0x1e0   :  { %v369_v0 = vpack.c.bf16 %v346_v63, %v346_v63 }
 0x1e2   :  { %426 = vmatmul.bf16.vlgmr.msra.gmra.mxu3 %v369_v0 }
 0x1e5   :  { %v347_v1 = vpop.f32.mrf.mxu2 }
 0x265   :  { %v427_v13 = vpop.f32.mrf.mxu3 }
 0x266   :  { %v451_v14 = vadd.f32 %v450_v2, %v427_v13 }
 0x268   :  { %v459_v15 = vadd.f32 %v1022_v12, %v451_v14 }
 0x26a   :  { %v460_v16 = vmin.f32 %v459_v15, 20.0 }
 0x26c   :  { %v461_v17 = vmul.f32 1.442695, %v460_v16 }
 0x26d   :  { %v429_v18 = vpop.f32.mrf.mxu3 }
 0x26e   :  { %1034 = vpow2.f32 %v461_v17 }
 0x274   :  { %v1035_v19 = vpop.eup %1034 }
 0x275   :  { %v463_v20 = vadd.f32 1.0, %v1035_v19 }
 0x277   :  { %v464_v21 = vmul.f32 %v463_v20, %v463_v20 }
 0x279   :  { %v467_v22 = vadd.f32 1.0, %v464_v21  ;;  %v859_v23 = vadd.f32 -1.0, %v464_v21 }
 0x27b   :  { %1036 = vrcp.f32 %v467_v22  ;;  %v466_v24 = vmul.f32 %v859_v23, %v459_v15 }
 0x281   :  { %v1037_v25 = vpop.eup %1036 }
 0x282   :  { %v469_v26 = vmul.f32 %v1037_v25, %v466_v24 }
 0x284   :  { %v487_v27 = vpack.c.bf16 %v469_v26, %v469_v26 }
 0x286   :  { %549 = vmatmul.bf16.vlgmr.msra.gmra.mxu0 %v487_v27 }
 0x303   :  { %v550_v37 = vpop.f32.mrf.mxu0 }
 0x304   :  { %v551_v38 = vadd.f32 %v1023_v36, %v550_v37 }
 0x306   :  { %v554_v39 = vmin.f32 %v551_v38, 20.0 }
 0x308   :  { %v555_v40 = vmul.f32 1.442695, %v554_v39 }
 0x30a   :  { %1038 = vpow2.f32 %v555_v40 }
 0x30b   :  { %v552_v41 = vpop.f32.mrf.mxu0 }
 0x310   :  { %v1039_v42 = vpop.eup %1038 }
 0x311   :  { %v557_v43 = vadd.f32 1.0, %v1039_v42 }
 0x313   :  { %v558_v44 = vmul.f32 %v557_v43, %v557_v43 }
 0x315   :  { %v561_v45 = vadd.f32 1.0, %v558_v44  ;;  %v893_v46 = vadd.f32 -1.0, %v558_v44 }
 0x317   :  { %1040 = vrcp.f32 %v561_v45  ;;  %v560_v47 = vmul.f32 %v893_v46, %v551_v38 }
 0x31d   :  { %v1041_v48 = vpop.eup %1040 }
 0x31e   :  { %v563_v49 = vmul.f32 %v1041_v48, %v560_v47 }
 0x320   :  { %v581_v50 = vpack.c.bf16 %v563_v49, %v563_v49 }
 0x322   :  { %643 = vmatmul.bf16.vlgmr.msrb.gmra.mxu1 %v581_v50 }
 0x39f   :  { %v644_v60 = vpop.f32.mrf.mxu1 }
 0x3a0   :  { %v645_v61 = vadd.f32 %v1024_v59, %v644_v60 }
 0x3a2   :  { %v648_v62 = vmin.f32 %v645_v61, 20.0 }
 0x3a4   :  { %v649_v63 = vmul.f32 1.442695, %v648_v62 }
 0x3a6   :  { %1042 = vpow2.f32 %v649_v63 }
 0x3a7   :  { %v646_v0 = vpop.f32.mrf.mxu1 }
 0x3ac   :  { %v1043_v1 = vpop.eup %1042 }
 0x3ad   :  { %v651_v2 = vadd.f32 1.0, %v1043_v1 }
 0x3af   :  { %v652_v3 = vmul.f32 %v651_v2, %v651_v2 }
 0x3b1   :  { %v655_v4 = vadd.f32 1.0, %v652_v3  ;;  %v927_v5 = vadd.f32 -1.0, %v652_v3 }
 0x3b3   :  { %1044 = vrcp.f32 %v655_v4  ;;  %v654_v6 = vmul.f32 %v927_v5, %v645_v61 }
 0x3b9   :  { %v1045_v7 = vpop.eup %1044 }
 0x3ba   :  { %v657_v8 = vmul.f32 %v1045_v7, %v654_v6 }
 0x3bc   :  { %v675_v9 = vpack.c.bf16 %v657_v8, %v657_v8 }
 0x3be   :  { %737 = vmatmul.bf16.vlgmr.msrb.gmra.mxu2 %v675_v9 }
 0x441   :  { %v738_v11 = vpop.f32.mrf.mxu2 }
 0x442   :  { %v739_v12 = vadd.f32 %v1025_v10, %v738_v11 }
 0x444   :  { %1046 = vtanh.f32 %v739_v12 }
 0x449   :  { %v740_v13 = vpop.f32.mrf.mxu2 }
 0x44a   :  { %v1047_v14 = vpop.eup %1046 }
 0x44b   :  { %744 = vst.msk [vmem:[%s1349_s9] sm:$0xff] %vm743_vm3, %v1047_v14 }
 0x44c   :  { %749 = vsyncpa [#allocation3], 1 }
 0x44d   :  { %750 = vsyncpa [#allocation5], 1 }
 0x44e   :  { %751 = vsyncpa [#allocation8], 1 }
 0x44f   :  { %752 = vsyncpa [#allocation11], 1 }

</bundles_post_ra>
